<compile_context>
chip_gen: v6e
topology: v6e:2x2x1
jax: 0.10.0
libtpu: 0.0.40
codegen_flags: <defaults>
</compile_context>

<pallas_src>
import functools

import jax
import jax.numpy as jnp
from jax import lax
from jax.experimental import pallas as pl
from jax.experimental.pallas import tpu as pltpu

TEMPERATURE = 0.1
BASE_TEMPERATURE = 0.07


def _pixel_contrast_kernel(pix_x_ref, seg_xt_ref, pix_y_ref, seg_yt_ref, out_ref,
                           *, stabilize):
    px = pix_x_ref[0]           # [P, D] f32
    sxt = seg_xt_ref[0]         # [D, S] f32 (pre-transposed)
    py = pix_y_ref[0]           # [P, 1]
    sy = seg_yt_ref[0]          # [1, S]

    p = px.shape[0]

    # mask[p, s] = 1.0 where pixel label == segment label
    mask = (py == sy).astype(jnp.float32)                             # [P, S]

    # Fold 1/temperature into the small [P, D] tile, cast both operands to bf16
    # for a single MXU pass with f32 accumulation.
    a = (px * jnp.float32(1.0 / TEMPERATURE)).astype(jnp.bfloat16)    # [P, D]
    b = sxt.astype(jnp.bfloat16)                                      # [D, S]
    adc = jnp.dot(a, b, preferred_element_type=jnp.float32)           # [P, S]

    if stabilize:
        # Matches torch: logits = adc - max(adc, axis=1) (detached max).
        logits = adc - jnp.max(adc, axis=1, keepdims=True)
    else:
        # Safe only for L2-normalized features (|adc| <= 1/T); saves one full
        # [P, S] XLU lane-reduce + subtract.
        logits = adc

    exp_logits = jnp.exp(logits)                                      # [P, S] (EUP)
    pos_exp = exp_logits * mask                                       # [P, S]
    # neg_logits = sum(exp * (1 - mask)) computed as total - positive (reuses
    # pos_exp; avoids a second [P, S] product).
    total_exp = jnp.sum(exp_logits, axis=1, keepdims=True)            # [P, 1]
    neg_logits = total_exp - jnp.sum(pos_exp, axis=1, keepdims=True)  # [P, 1]

    log_prob = logits - jnp.log(exp_logits + neg_logits)              # [P, S]

    pos_sum = jnp.sum(mask * log_prob, axis=1, keepdims=True)         # [P, 1]
    mask_sum = jnp.sum(mask, axis=1, keepdims=True)                   # [P, 1]
    # EUP approximate reciprocal instead of a VALU divide.
    mean_log_prob_pos = pos_sum * pl.reciprocal(mask_sum, approx=True)

    # Fold -(T / base_T) and the per-batch mean (1/P) into one constant.
    scale = jnp.float32(-(TEMPERATURE / BASE_TEMPERATURE) / p)
    batch_loss = scale * jnp.sum(mean_log_prob_pos)                   # scalar

    out_ref[...] = jnp.broadcast_to(batch_loss, (1, 1, 1))


@functools.partial(jax.jit, static_argnames=("stabilize",))
def pixel_contrast_loss(pix_x, seg_x, pix_y, seg_y, stabilize=True):
    """pix_x: [B,P,D]  seg_x: [B,S,D]  pix_y: [B,P,1]  seg_y: [B,S,1] (float labels)."""
    B, P, D = pix_x.shape
    S = seg_x.shape[1]

    # Pre-transpose once in the wrapper (tiny arrays) so the kernel's MXU RHS is
    # contracted on its sublane dim and the mask compare is a plain broadcast.
    seg_xt = jnp.swapaxes(seg_x, 1, 2)     # [B, D, S]
    seg_yt = jnp.swapaxes(seg_y, 1, 2)     # [B, 1, S]

    kernel = functools.partial(_pixel_contrast_kernel, stabilize=stabilize)

    per_batch = pl.pallas_call(
        kernel,
        out_shape=jax.ShapeDtypeStruct((B, 1, 1), jnp.float32),
        grid_spec=pltpu.PrefetchScalarGridSpec(
            num_scalar_prefetch=0,
            grid=(B,),
            in_specs=[
                pl.BlockSpec((1, P, D), lambda b: (b, 0, 0)),
                pl.BlockSpec((1, D, S), lambda b: (b, 0, 0)),
                pl.BlockSpec((1, P, 1), lambda b: (b, 0, 0)),
                pl.BlockSpec((1, 1, S), lambda b: (b, 0, 0)),
            ],
            out_specs=pl.BlockSpec((1, 1, 1), lambda b: (b, 0, 0)),
        ),
        compiler_params=pltpu.CompilerParams(
            # Independent per-batch blocks -> batch axis can shard across the
            # two TensorCores on v7x; harmless on single-TC v5e/v6e.
            dimension_semantics=("parallel",),
        ),
    )(pix_x, seg_xt, pix_y, seg_yt)

    # Per-batch means are already folded in-kernel; just sum and divide by B.
    return jnp.sum(per_batch) / B


def pixel_contrast_loss_ref(pix_x, seg_x, pix_y, seg_y):
    """Pure-JAX f32 HIGHEST-precision reference mirroring the PyTorch _contrastive loop."""
    B = pix_x.shape[0]
    total = jnp.float32(0.0)
    for i in range(B):
        px, sx = pix_x[i], seg_x[i]
        py, sy = pix_y[i], seg_y[i]                 # [P,1], [S,1]
        mask = (py == sy.T).astype(jnp.float32)
        adc = jnp.einsum("pd,sd->ps", px, sx,
                         precision=lax.Precision.HIGHEST) / TEMPERATURE
        logits = adc - jnp.max(adc, axis=1, keepdims=True)
        neg = jnp.sum(jnp.exp(logits) * (1.0 - mask), axis=1, keepdims=True)
        log_prob = logits - jnp.log(jnp.exp(logits) + neg)
        mlpp = jnp.sum(mask * log_prob, axis=1) / jnp.sum(mask, axis=1)
        loss = -(TEMPERATURE / BASE_TEMPERATURE) * mlpp
        total = total + jnp.mean(loss)
    return total / B


if __name__ == "__main__":
    key = jax.random.PRNGKey(0)
    B, P, S, D = 2, 128, 128, 32  # batch, pixel anchors, segment anchors, feature dim

    k1, k2, k3 = jax.random.split(key, 3)
    pix_x = jax.random.normal(k1, (B, P, D), dtype=jnp.float32)
    seg_x = jax.random.normal(k2, (B, S, D), dtype=jnp.float32)
    # L2-normalize features (typical for contrastive embeddings)
    pix_x = pix_x / jnp.linalg.norm(pix_x, axis=-1, keepdims=True)
    seg_x = seg_x / jnp.linalg.norm(seg_x, axis=-1, keepdims=True)

    num_classes = 4
    # segment labels cover every class so mask.sum(1) > 0 for all anchors
    seg_y_flat = (jnp.arange(S) % num_classes).astype(jnp.float32)       # [S]
    pix_y_flat = jax.random.randint(k3, (B, P), 0, num_classes).astype(jnp.float32)

    pix_y = pix_y_flat.reshape(B, P, 1)
    seg_y = jnp.broadcast_to(seg_y_flat.reshape(1, S, 1), (B, S, 1))

    loss = pixel_contrast_loss(pix_x, seg_x, pix_y, seg_y)
    jax.block_until_ready(loss)

    ref = pixel_contrast_loss_ref(pix_x, seg_x, pix_y, seg_y)
    # Tolerance covers the single-pass bf16 matmul + approx reciprocal vs. the
    # f32 HIGHEST-precision reference.
    assert jnp.allclose(loss, ref, rtol=1e-2, atol=1e-2), (loss, ref)

    print("KERNEL_OK")
</pallas_src>

<mosaic_0001>
module attributes {stable_mosaic.version = 11 : i64} {
  func.func @_pixel_contrast_kernel(%arg0: i32, %arg1: memref<1x128x32xf32, #tpu.memory_space<vmem>>, %arg2: memref<1x32x128xf32, #tpu.memory_space<vmem>>, %arg3: memref<1x128x1xf32, #tpu.memory_space<vmem>>, %arg4: memref<1x1x128xf32, #tpu.memory_space<vmem>>, %arg5: memref<1x1x1xf32, #tpu.memory_space<vmem>>) attributes {dimension_semantics = [#tpu.dimension_semantics<parallel>], iteration_bounds = array<i64: 2>, scalar_prefetch = 0 : i64, scratch_operands = 0 : i64, tpu.core_type = #tpu.core_type<tc>, window_params = [{transform_indices = @transform_0, window_bounds = array<i64: 1, 128, 32>}, {transform_indices = @transform_1, window_bounds = array<i64: 1, 32, 128>}, {transform_indices = @transform_2, window_bounds = array<i64: 1, 128, 1>}, {transform_indices = @transform_3, window_bounds = array<i64: 1, 1, 128>}, {transform_indices = @transform_4, window_bounds = array<i64: 1, 1, 1>}]} {
    %c0 = arith.constant 0 : index
    %c0_0 = arith.constant 0 : index
    %c0_1 = arith.constant 0 : index
    %0 = vector.load %arg1[%c0, %c0_0, %c0_1] : memref<1x128x32xf32, #tpu.memory_space<vmem>>, vector<1x128x32xf32>
    %1 = vector.shape_cast %0 : vector<1x128x32xf32> to vector<128x32xf32>
    %c0_2 = arith.constant 0 : index
    %c0_3 = arith.constant 0 : index
    %c0_4 = arith.constant 0 : index
    %2 = vector.load %arg2[%c0_2, %c0_3, %c0_4] : memref<1x32x128xf32, #tpu.memory_space<vmem>>, vector<1x32x128xf32>
    %3 = vector.shape_cast %2 : vector<1x32x128xf32> to vector<32x128xf32>
    %c0_5 = arith.constant 0 : index
    %c0_6 = arith.constant 0 : index
    %c0_7 = arith.constant 0 : index
    %4 = vector.load %arg3[%c0_5, %c0_6, %c0_7] : memref<1x128x1xf32, #tpu.memory_space<vmem>>, vector<1x128x1xf32>
    %5 = vector.shape_cast %4 : vector<1x128x1xf32> to vector<128x1xf32>
    %c0_8 = arith.constant 0 : index
    %c0_9 = arith.constant 0 : index
    %c0_10 = arith.constant 0 : index
    %6 = vector.load %arg4[%c0_8, %c0_9, %c0_10] : memref<1x1x128xf32, #tpu.memory_space<vmem>>, vector<1x1x128xf32>
    %7 = vector.shape_cast %6 : vector<1x1x128xf32> to vector<1x128xf32>
    %8 = vector.broadcast %5 : vector<128x1xf32> to vector<128x128xf32>
    %9 = vector.broadcast %7 : vector<1x128xf32> to vector<128x128xf32>
    %10 = arith.cmpf oeq, %8, %9 : vector<128x128xf32>
    %11 = arith.extui %10 : vector<128x128xi1> to vector<128x128xi32>
    %12 = arith.sitofp %11 : vector<128x128xi32> to vector<128x128xf32>
    %cst = arith.constant 1.000000e+01 : f32
    %13 = vector.broadcast %cst : f32 to vector<128x32xf32>
    %14 = arith.mulf %1, %13 : vector<128x32xf32>
    %15 = arith.truncf %14 : vector<128x32xf32> to vector<128x32xbf16>
    %16 = arith.truncf %3 : vector<32x128xf32> to vector<32x128xbf16>
    %cst_11 = arith.constant dense<0.000000e+00> : vector<128x128xf32>
    %17 = tpu.matmul %15, %16, %cst_11 {dimension_numbers = #tpu.dot_dimension_numbers<[1], [0], [0], [1], [0, 0, 1, 1], [], []>} : vector<128x32xbf16>, vector<32x128xbf16>, vector<128x128xf32> -> vector<128x128xf32>
    %cst_12 = arith.constant dense<0xFF800000> : vector<128xf32>
    %18 = vector.multi_reduction <maximumf>, %17, %cst_12 [1] : vector<128x128xf32> to vector<128xf32>
    %19 = vector.shape_cast %18 : vector<128xf32> to vector<128x1xf32>
    %20 = vector.broadcast %19 : vector<128x1xf32> to vector<128x128xf32>
    %21 = arith.subf %17, %20 : vector<128x128xf32>
    %22 = math.exp %21 : vector<128x128xf32>
    %23 = arith.mulf %22, %12 : vector<128x128xf32>
    %cst_13 = arith.constant dense<0.000000e+00> : vector<128xf32>
    %24 = vector.multi_reduction <add>, %22, %cst_13 [1] : vector<128x128xf32> to vector<128xf32>
    %25 = vector.shape_cast %24 : vector<128xf32> to vector<128x1xf32>
    %cst_14 = arith.constant dense<0.000000e+00> : vector<128xf32>
    %26 = vector.multi_reduction <add>, %23, %cst_14 [1] : vector<128x128xf32> to vector<128xf32>
    %27 = vector.shape_cast %26 : vector<128xf32> to vector<128x1xf32>
    %28 = arith.subf %25, %27 : vector<128x1xf32>
    %29 = vector.broadcast %28 : vector<128x1xf32> to vector<128x128xf32>
    %30 = arith.addf %22, %29 : vector<128x128xf32>
    %31 = math.log %30 : vector<128x128xf32>
    %32 = arith.subf %21, %31 : vector<128x128xf32>
    %33 = arith.mulf %12, %32 : vector<128x128xf32>
    %cst_15 = arith.constant dense<0.000000e+00> : vector<128xf32>
    %34 = vector.multi_reduction <add>, %33, %cst_15 [1] : vector<128x128xf32> to vector<128xf32>
    %35 = vector.shape_cast %34 : vector<128xf32> to vector<128x1xf32>
    %cst_16 = arith.constant dense<0.000000e+00> : vector<128xf32>
    %36 = vector.multi_reduction <add>, %12, %cst_16 [1] : vector<128x128xf32> to vector<128xf32>
    %37 = vector.shape_cast %36 : vector<128xf32> to vector<128x1xf32>
    %38 = tpu.reciprocal %37 {approx = true} : vector<128x1xf32> -> vector<128x1xf32>
    %39 = arith.mulf %35, %38 : vector<128x1xf32>
    %40 = vector.shape_cast %39 : vector<128x1xf32> to vector<1x128x1xf32>
    %cst_17 = arith.constant dense<0.000000e+00> : vector<1xf32>
    %41 = vector.multi_reduction <add>, %40, %cst_17 [1, 2] : vector<1x128x1xf32> to vector<1xf32>
    %42 = vector.shape_cast %41 : vector<1xf32> to vector<1x1x1xf32>
    %43 = vector.extract %42[0, 0, 0] : f32 from vector<1x1x1xf32>
    %cst_18 = arith.constant -0.0111607146 : f32
    %44 = arith.mulf %cst_18, %43 : f32
    %45 = vector.broadcast %44 : f32 to vector<1x1x1xf32>
    %c0_19 = arith.constant 0 : index
    %c0_20 = arith.constant 0 : index
    %c0_21 = arith.constant 0 : index
    %46 = vector.load %arg5[%c0_19, %c0_20, %c0_21] : memref<1x1x1xf32, #tpu.memory_space<vmem>>, vector<1x1x1xf32>
    tpu.vector_store %arg5[%c0_19, %c0_20, %c0_21], %45 {strides = array<i32>} : memref<1x1x1xf32, #tpu.memory_space<vmem>>, vector<1x1x1xf32>,
    return
  }
  func.func @transform_0(%arg0: i32) -> (i32, i32, i32) {
    %c0_i32 = arith.constant 0 : i32
    %c0_i32_0 = arith.constant 0 : i32
    %c0_i32_1 = arith.constant 0 : i32
    return %arg0, %c0_i32, %c0_i32_0 : i32, i32, i32
  }
  func.func @transform_1(%arg0: i32) -> (i32, i32, i32) {
    %c0_i32 = arith.constant 0 : i32
    %c0_i32_0 = arith.constant 0 : i32
    %c0_i32_1 = arith.constant 0 : i32
    return %arg0, %c0_i32, %c0_i32_0 : i32, i32, i32
  }
  func.func @transform_2(%arg0: i32) -> (i32, i32, i32) {
    %c0_i32 = arith.constant 0 : i32
    %c0_i32_0 = arith.constant 0 : i32
    %c0_i32_1 = arith.constant 0 : i32
    return %arg0, %c0_i32, %c0_i32_0 : i32, i32, i32
  }
  func.func @transform_3(%arg0: i32) -> (i32, i32, i32) {
    %c0_i32 = arith.constant 0 : i32
    %c0_i32_0 = arith.constant 0 : i32
    %c0_i32_1 = arith.constant 0 : i32
    return %arg0, %c0_i32, %c0_i32_0 : i32, i32, i32
  }
  func.func @transform_4(%arg0: i32) -> (i32, i32, i32) {
    %c0_i32 = arith.constant 0 : i32
    %c0_i32_0 = arith.constant 0 : i32
    %c0_i32_1 = arith.constant 0 : i32
    return %arg0, %c0_i32, %c0_i32_0 : i32, i32, i32
  }
}

</mosaic_0001>

<bundles_post_ra>
// kernel: pixel_contrast_loss.1
= control target key start
LH: loop header
LB: loop body
LE: loop exit
PB: predicated region body
PF: predicated region fallthrough
CT: control target
= control target key end

     0   :  { %s1265_s15 = smov 0   ;;  %s1700_s0 = inlined_call_operand.vmem [shape: f32[2,128,32], index: 0, kind: input, shape index: {}]   ;;  %s1701_s1 = inlined_call_operand.vmem [shape: f32[2,32,128], index: 1, kind: input, shape index: {}]   ;;  %s1702_s2 = inlined_call_operand.vmem [shape: f32[2,128,1], index: 2, kind: input, shape index: {}]   ;;  %s1703_s3 = inlined_call_operand.vmem [shape: f32[2,1,128], index: 3, kind: input, shape index: {}]   ;;  %s1704_s4 = inlined_call_operand.vmem [shape: f32[2,1,1], index: 4, kind: output, shape index: {}]  }
   0x1 LB: > { %s1045_s16 = sadd.s32 4294967295, %s1236_s15   ;;  %p1049_p0 = scmp.ge.s32.totalorder %s1236_s15, 1  ;;  %s1236_s15 = sphi %s1265_s15, %s14_s15  }
   0x2   : > { %p190_p1 = scmp.lt.s32.totalorder %s1236_s15, 3 }
   0x4   : > { %p191_p2 = pnand %p1049_p0, %p190_p1 }
   0x6   : > { %194 = sbr.rel (%p191_p2) target bundleno = 954 (0x3ba), region = 36 }
   0xb   : > { %p227_p3 = scmp.lt.s32.totalorder %s1045_s16, 1  ;;  %v1238_v0 = vmov 0   ;;  %vm446_vm0 = vcmask 261120  }
   0xc   : > { %1133 = vset.pattern.permute.xlu0 %v1238_v0  ;;  %1132 = vset.pattern.permute.xlu1 %v1238_v0 }
   0xd   : > { %s1718_s16 = smov (!%p227_p3, %s1045_s16), 1 }
   0xe   : > { %s1083_s17 = sshll.u32 %s1718_s16, 7  ;;  %s1084_s18 = sshll.u32 %s1718_s16, 5 }
   0xf   : > { %s1280_s21 = scalar_lea.vmem %s1700_s0, %s1083_s17  ;;  %s236_s24 = scalar_lea.vmem %s1701_s1, %s1084_s18 }
  0x10   : > { %v267_v1 = vld [vmem:[%s236_s24 + $0x10] sm:$0xff]  ;;  %v268_v2 = vld [vmem:[%s236_s24 + $0x18] sm:$0xff]  ;;  %v265_v3 = vld [vmem:[%s236_s24] sm:$0xff]  ;;  %s1295_s27 = scalar_lea.vmem %s1702_s2, %s1083_s17  ;;  %s244_s30 = scalar_lea.vmem %s1703_s3, %s1718_s16 }
  0x11   : > { %v445_v4 = vpack.c.bf16 %v268_v2, %v267_v1  ;;  %v266_v5 = vld [vmem:[%s236_s24 + $0x8] sm:$0xff]  ;;  %v249_v6 = vld [vmem:[%s1280_s21] sm:$0xff]  ;;  %v251_v15 = vld [vmem:[%s1280_s21 + $0x10] sm:$0xff]  ;;  %s247_s8 = scalar_lea.vmem %s1704_s4, %s1718_s16 }
  0x12   : > { %v444_v7 = vpack.c.bf16 %v266_v5, %v265_v3  ;;  %v250_v8 = vld [vmem:[%s1280_s21 + $0x8] sm:$0xff]  ;;  %v420_v9 = vmul.f32 10.0, %v249_v6  ;;  %v257_v10 = vld [vmem:[%s1280_s21 + $0x40] sm:$0xff]  ;;  %v252_v16 = vld [vmem:[%s1280_s21 + $0x18] sm:$0xff]  ;;  %v422_v18 = vmul.f32 10.0, %v251_v15 }
  0x13   : > { %v258_v11 = vld [vmem:[%s1280_s21 + $0x48] sm:$0xff]  ;;  %1096 = vmatprep.subr.bf16.mxu0 %v445_v4  ;;  %1116 = vmatprep.subr.bf16.mxu1 %v445_v4  ;;  %v421_v12 = vmul.f32 10.0, %v250_v8  ;;  %v428_v13 = vmul.f32 10.0, %v257_v10  ;;  %v259_v17 = vld [vmem:[%s1280_s21 + $0x50] sm:$0xff]  ;;  %v423_v19 = vmul.f32 10.0, %v252_v16  ;;  %v260_v20 = vld [vmem:[%s1280_s21 + $0x58] sm:$0xff] }
  0x14   : > { %v429_v14 = vmul.f32 10.0, %v258_v11  ;;  %1097 = vmatpush3.bf16.msra.mxu0 %v445_v4  ;;  %1118 = vmatpush3.bf16.msra.mxu1 %v445_v4  ;;  %v430_v21 = vmul.f32 10.0, %v259_v17  ;;  %v253_v22 = vld [vmem:[%s1280_s21 + $0x20] sm:$0xff]  ;;  %v254_v23 = vld [vmem:[%s1280_s21 + $0x28] sm:$0xff]  ;;  %v431_v26 = vmul.f32 10.0, %v260_v20  ;;  %v255_v33 = vld [vmem:[%s1280_s21 + $0x30] sm:$0xff] }
  0x15   : > { %1098 = vmatprep.subr.bf16.mxu0 %v444_v7  ;;  %1117 = vmatprep.subr.bf16.mxu1 %v444_v7  ;;  %v436_v24 = vpack.c.bf16 %v421_v12, %v420_v9  ;;  %v424_v27 = vmul.f32 10.0, %v253_v22  ;;  %v261_v28 = vld [vmem:[%s1280_s21 + $0x60] sm:$0xff]  ;;  %v425_v29 = vmul.f32 10.0, %v254_v23  ;;  %v262_v30 = vld [vmem:[%s1280_s21 + $0x68] sm:$0xff]  ;;  %v437_v31 = vpack.c.bf16 %v423_v19, %v422_v18  ;;  %v256_v38 = vld [vmem:[%s1280_s21 + $0x38] sm:$0xff] }
  0x16   : > { %v440_v25 = vpack.c.bf16 %v429_v14, %v428_v13  ;;  %v441_v32 = vpack.c.bf16 %v431_v26, %v430_v21  ;;  %v432_v34 = vmul.f32 10.0, %v261_v28  ;;  %v433_v35 = vmul.f32 10.0, %v262_v30  ;;  %v270_v36 = vld [vmem:[%s1295_s27 + $0x8] sm:$0xff]  ;;  %v263_v39 = vld [vmem:[%s1280_s21 + $0x70] sm:$0xff]  ;;  %v264_v40 = vld [vmem:[%s1280_s21 + $0x78] sm:$0xff] }
  0x17   : > { %1100 = vmatprep.mubr.msk.bf16.mxu0 %vm446_vm0, %v436_v24  ;;  %v438_v37 = vpack.c.bf16 %v425_v29, %v424_v27  ;;  %293 = vperm.xlu0 %1133, %v270_v36   ;;  %v271_v42 = vld [vmem:[%s1295_s27 + $0x10] sm:$0xff]  ;;  %v269_v43 = vld [vmem:[%s1295_s27] sm:$0xff]  ;;  %v426_v44 = vmul.f32 10.0, %v255_v33  ;;  %v427_v45 = vmul.f32 10.0, %v256_v38  ;;  %v434_v46 = vmul.f32 10.0, %v263_v39  ;;  %v272_v49 = vld [vmem:[%s1295_s27 + $0x18] sm:$0xff] }
  0x18   : > { %1108 = vmatprep.mubr.msk.bf16.mxu1 %vm446_vm0, %v440_v25  ;;  %1099 = vmatpush3.bf16.msra.mxu0 %v444_v7  ;;  %v442_v41 = vpack.c.bf16 %v433_v35, %v432_v34  ;;  %v435_v47 = vmul.f32 10.0, %v264_v40  ;;  %v273_v48 = vld [vmem:[%s1295_s27 + $0x20] sm:$0xff]  ;;  %v274_v52 = vld [vmem:[%s1295_s27 + $0x28] sm:$0xff]  ;;  %v275_v53 = vld [vmem:[%s1295_s27 + $0x30] sm:$0xff] }
  0x19   : > { %1119 = vmatpush3.bf16.msra.mxu1 %v444_v7  ;;  %288 = vperm.xlu1 %1132, %v269_v43   ;;  %v439_v50 = vpack.c.bf16 %v427_v45, %v426_v44  ;;  %v276_v54 = vld [vmem:[%s1295_s27 + $0x38] sm:$0xff]  ;;  %v277_v56 = vld [vmem:[%s1295_s27 + $0x40] sm:$0xff]  ;;  %v282_v57 = vld [vmem:[%s1295_s27 + $0x68] sm:$0xff] }
  0x1a   : > { %v443_v51 = vpack.c.bf16 %v435_v47, %v434_v46  ;;  %v280_v55 = vld [vmem:[%s1295_s27 + $0x58] sm:$0xff]  ;;  %v278_v58 = vld [vmem:[%s1295_s27 + $0x48] sm:$0xff]  ;;  %v279_v59 = vld [vmem:[%s1295_s27 + $0x50] sm:$0xff] }
  0x1b   : > { %1101 = vmatmul.mubr.msk.bf16.vlgmr.msra.gmra.mxu0 %vm446_vm0, %v437_v31  ;;  %298 = vperm.xlu0 %1133, %v271_v42   ;;  %v281_v60 = vld [vmem:[%s1295_s27 + $0x60] sm:$0xff]  ;;  %v284_v13 = vld [vmem:[%s1295_s27 + $0x78] sm:$0xff]  ;;  %v283_v14 = vld [vmem:[%s1295_s27 + $0x70] sm:$0xff] }
  0x1c   : > { %1109 = vmatmul.mubr.msk.bf16.vlgmr.msra.gmra.mxu1 %vm446_vm0, %v441_v32  ;;  %1104 = vmatprep.mubr.msk.bf16.mxu0 %vm446_vm0, %v438_v37 }
  0x1d   : > { %1112 = vmatprep.mubr.msk.bf16.mxu1 %vm446_vm0, %v442_v41  ;;  %303 = vperm.xlu1 %1132, %v272_v49   ;;  %v1407_v49 = vld [vmem:[%s244_s30] ss:$0 sm:$0xff] }
  0x1f   : > { %308 = vperm.xlu0 %1133, %v273_v48  }
  0x21   : > { %318 = vperm.xlu1 %1132, %v275_v53  }
  0x23   : > { %1105 = vmatmul.mubr.msk.bf16.gmra.mxu0 %vm446_vm0, %v439_v50  ;;  %313 = vperm.xlu0 %1133, %v274_v52  }
  0x24   : > { %1113 = vmatmul.mubr.msk.bf16.gmra.mxu1 %vm446_vm0, %v443_v51 }
  0x25   : > { %343 = vperm.xlu1 %1132, %v280_v55  }
  0x27   : > { %323 = vperm.xlu0 %1133, %v276_v54  }
  0x29   : > { %353 = vperm.xlu1 %1132, %v282_v57  }
  0x2b   : > { %328 = vperm.xlu0 %1133, %v277_v56  }
  0x2f   : > { %333 = vperm.xlu0 %1133, %v278_v58  }
  0x33   : > { %338 = vperm.xlu0 %1133, %v279_v59   ;;  %v1239_v59 = vmov 0.0  }
  0x37   : > { %348 = vperm.xlu0 %1133, %v281_v60  }
  0x92   : > { %v1360_v15 = vpop.permute.xlu0 %293 }
  0x93   : > { %vm373_vm6 = vcmp.eq.f32.partialorder %v1360_v15, %v1407_v49 }
  0x94   : > { %v1368_v20 = vpop.permute.xlu1 %288 }
  0x95   : > { %vm372_vm3 = vcmp.eq.f32.partialorder %v1368_v20, %v1407_v49 }
  0x96   : > { %v299_v16 = vpop.permute.xlu0 %298 }
  0x97   : > { %vm374_vm1 = vcmp.eq.f32.partialorder %v299_v16, %v1407_v49 }
  0x98   : > { %v1372_v22 = vpop.permute.xlu1 %303  ;;  %v1429_v60 = vsel %vm374_vm1, 1.0, %v1239_v59  ;;  %vm920_vm1 = vcmask 7168  }
  0x99   : > { %vm375_vm5 = vcmp.eq.f32.partialorder %v1372_v22, %v1407_v49 }
  0x9a   : > { %v1362_v17 = vpop.permute.xlu0 %308 }
  0x9b   : > { %vm376_vm9 = vcmp.eq.f32.partialorder %v1362_v17, %v1407_v49 }
  0x9c   : > { %v1376_v24 = vpop.permute.xlu1 %318 }
  0x9d   : > { %vm378_vm8 = vcmp.eq.f32.partialorder %v1376_v24, %v1407_v49 }
  0x9e   : > { %v1364_v18 = vpop.permute.xlu0 %313 }
  0x9f   : > { %vm377_vm11 = vcmp.eq.f32.partialorder %v1364_v18, %v1407_v49 }
  0xa0   : > { %v1378_v26 = vpop.permute.xlu1 %343 }
  0xa1   : > { %vm383_vm12 = vcmp.eq.f32.partialorder %v1378_v26, %v1407_v49 }
  0xa2   : > { %v1366_v19 = vpop.permute.xlu0 %323  ;;  %v1576_v18 = vsel %vm383_vm12, 1.0, %v1239_v59 }
  0xa3   : > { %vm379_vm10 = vcmp.eq.f32.partialorder %v1366_v19, %v1407_v49  ;;  %1712 = vst [vmem:[#allocation5_spill] sm:$0xff] %v1576_v18 }
  0xa4   : > { %v1382_v28 = vpop.permute.xlu1 %353 }
  0xa5   : > { %vm385_vm15 = vcmp.eq.f32.partialorder %v1382_v28, %v1407_v49 }
  0xa6   : > { %v1370_v21 = vpop.permute.xlu0 %328 }
  0xa7   : > { %vm380_vm4 = vcmp.eq.f32.partialorder %v1370_v21, %v1407_v49 }
  0xaa   : > { %v1374_v23 = vpop.permute.xlu0 %333 }
  0xab   : > { %vm381_vm7 = vcmp.eq.f32.partialorder %v1374_v23, %v1407_v49 }
  0xae   : > { %v339_v25 = vpop.permute.xlu0 %338 }
  0xaf   : > { %vm382_vm2 = vcmp.eq.f32.partialorder %v339_v25, %v1407_v49  ;;  %v1458_v25 = vsel %vm372_vm3, 1.0, %v1239_v59 }
  0xb2   : > { %v1380_v27 = vpop.permute.xlu0 %348 }
  0xb3   : > { %vm384_vm13 = vcmp.eq.f32.partialorder %v1380_v27, %v1407_v49 }
  0xb4   : > { %v1587_v26 = vsel %vm384_vm13, 1.0, %v1239_v59 }
  0xdb   : > { %v1102_v61 = vpop.f32.mrf.mxu0 }
  0xdc   : > { %v1110_v62 = vpop.f32.mrf.mxu1  ;;  %572 = vmax.xlane.f32.xlu1 %v1102_v61 }
  0xdd   : > { %588 = vmax.xlane.f32.xlu0 %v1110_v62  ;;  %v505_v63 = vpop.f32.mrf.mxu0 }
  0xde   : > { %v537_v0 = vpop.f32.mrf.mxu1 }
  0xdf   : > { %v1103_v1 = vpop.f32.mrf.mxu0 }
  0xe0   : > { %v1328_v2 = vpop.f32.mrf.mxu1  ;;  %574 = vmax.xlane.f32.xlu1 %v1103_v1 }
  0xe1   : > { %568 = vmax.xlane.f32.xlu0 %v505_v63  ;;  %v508_v3 = vpop.f32.mrf.mxu0 }
  0xe2   : > { %v1330_v4 = vpop.f32.mrf.mxu1 }
  0xe3   : > { %v1332_v5 = vpop.f32.mrf.mxu0 }
  0xe4   : > { %590 = vmax.xlane.f32.xlu1 %v1328_v2  ;;  %v1337_v7 = vpop.f32.mrf.mxu1 }
  0xe5   : > { %584 = vmax.xlane.f32.xlu0 %v537_v0  ;;  %v1335_v6 = vpop.f32.mrf.mxu0 }
  0xe6   : > { %v1342_v9 = vpop.f32.mrf.mxu1 }
  0xe7   : > { %v1340_v8 = vpop.f32.mrf.mxu0 }
  0xe8   : > { %586 = vmax.xlane.f32.xlu1 %v1330_v4  ;;  %v1346_v10 = vpop.f32.mrf.mxu1 }
  0xe9   : > { %570 = vmax.xlane.f32.xlu0 %v508_v3  ;;  %v1350_v11 = vpop.f32.mrf.mxu0 }
  0xea   : > { %v1354_v12 = vpop.f32.mrf.mxu1 }
  0xec   : > { %582 = vmax.xlane.f32.xlu1 %v1340_v8 }
  0xed   : > { %580 = vmax.xlane.f32.xlu0 %v1332_v5 }
  0xf0   : > { %598 = vmax.xlane.f32.xlu1 %v1346_v10 }
  0xf1   : > { %596 = vmax.xlane.f32.xlu0 %v1337_v7 }
  0xf4   : > { %578 = vmax.xlane.f32.xlu1 %v1350_v11 }
  0xf5   : > { %576 = vmax.xlane.f32.xlu0 %v1335_v6 }
  0xf8   : > { %594 = vmax.xlane.f32.xlu1 %v1354_v12 }
  0xf9   : > { %592 = vmax.xlane.f32.xlu0 %v1342_v9 }
 0x109   : > { %363 = vperm.xlu1 %1132, %v284_v13  }
 0x10f   : > { %358 = vperm.xlu0 %1133, %v283_v14  }
 0x165   : > { %v573_v30 = vpop.xlane.xlu1 %572 }
 0x166   : > { %v589_v29 = vpop.xlane.xlu0 %588  ;;  %v1384_v31 = vsub.f32 %v1102_v61, %v573_v30 }
 0x167   : > { %v1386_v32 = vsub.f32 %v1110_v62, %v589_v29 }
 0x168   : > { %v620_v33 = vmul.f32 1.442695, %v1384_v31 }
 0x169   : > { %v575_v35 = vpop.xlane.xlu1 %574  ;;  %v636_v37 = vmul.f32 1.442695, %v1386_v32 }
 0x16a   : > { %v569_v34 = vpop.xlane.xlu0 %568  ;;  %1134 = vpow2.f32 %v620_v33  ;;  %v1397_v42 = vsub.f32 %v1103_v1, %v575_v35  ;;  %v1472_v33 = vsel %vm380_vm4, 1.0, %v1239_v59 }
 0x16b   : > { %v1389_v36 = vsub.f32 %v505_v63, %v569_v34 }
 0x16c   : > { %v622_v46 = vmul.f32 1.442695, %v1397_v42 }
 0x16d   : > { %v616_v38 = vmul.f32 1.442695, %v1389_v36  ;;  %v1393_v40 = vpop.xlane.xlu1 %590 }
 0x16e   : > { %v585_v39 = vpop.xlane.xlu0 %584  ;;  %v1481_v34 = vsub.f32 %v1328_v2, %v1393_v40 }
 0x16f   : > { %1136 = vpow2.f32 %v616_v38  ;;  %v1395_v41 = vsub.f32 %v537_v0, %v585_v39  ;;  %v1487_v38 = vsel %vm375_vm5, 1.0, %v1239_v59 }
 0x170   : > { %1138 = vpow2.f32 %v636_v37  ;;  %v638_v2 = vmul.f32 1.442695, %v1481_v34 }
 0x171   : > { %v632_v43 = vmul.f32 1.442695, %v1395_v41  ;;  %v587_v45 = vpop.xlane.xlu1 %586 }
 0x172   : > { %v571_v44 = vpop.xlane.xlu0 %570  ;;  %v1410_v50 = vsub.f32 %v1330_v4, %v587_v45  ;;  %v1444_v4 = vsel %vm382_vm2, 1.0, %v1239_v59  ;;  %vm963_vm2 = vcmask 0  }
 0x173   : > { %1140 = vpow2.f32 %v632_v43  ;;  %v1401_v47 = vsub.f32 %v508_v3, %v571_v44  ;;  %v1501_v44 = vsel %vm373_vm6, 1.0, %v1239_v59 }
 0x174   : > { %1142 = vpow2.f32 %v622_v46  ;;  %v634_v56 = vmul.f32 1.442695, %v1410_v50 }
 0x175   : > { %v618_v51 = vmul.f32 1.442695, %v1401_v47  ;;  %v583_v53 = vpop.xlane.xlu1 %582 }
 0x176   : > { %v581_v48 = vpop.xlane.xlu0 %580  ;;  %v1452_v13 = vsub.f32 %v1340_v8, %v583_v53 }
 0x177   : > { %v1413_v52 = vpop.eup %1134  ;;  %1144 = vpow2.f32 %v618_v51  ;;  %v1423_v57 = vsub.f32 %v1332_v5, %v581_v48  ;;  %v1515_v48 = vsel %vm381_vm7, 1.0, %v1239_v59 }
 0x178   : > { %668 = vadd.xlane.f32.xlu1 %v1413_v52  ;;  %v650_v63 = vmul.f32 %v1413_v52, %v1429_v60  ;;  %1146 = vpow2.f32 %v634_v56  ;;  %v630_v8 = vmul.f32 1.442695, %v1452_v13  ;;  %v1530_v56 = vsel %vm378_vm8, 1.0, %v1239_v59 }
 0x179   : > { %v1433_v62 = vpop.xlane.xlu1 %598  ;;  %v628_v1 = vmul.f32 1.442695, %v1423_v57 }
 0x17a   : > { %v1416_v54 = vpop.xlane.xlu0 %596 }
 0x17b   : > { %1148 = vpow2.f32 %v628_v1  ;;  %v1524_v51 = vsub.f32 %v1337_v7, %v1416_v54  ;;  %v1540_v54 = vsub.f32 %v1346_v10, %v1433_v62  ;;  %v1556_v62 = vsel %vm379_vm10, 1.0, %v1239_v59 }
 0x17c   : > { %v1419_v55 = vpop.eup %1136 }
 0x17d   : > { %v1425_v58 = vpop.eup %1138  ;;  %664 = vadd.xlane.f32.xlu0 %v1419_v55  ;;  %v579_v16 = vpop.xlane.xlu1 %578  ;;  %v648_v20 = vmul.f32 %v1419_v55, %v1458_v25  ;;  %1710 = vst [vmem:[#allocation3_spill] sm:$0xff] %v1524_v51  ;;  %v644_v7 = vmul.f32 1.442695, %v1524_v51  ;;  %1711 = vst [vmem:[#allocation4_spill] sm:$0xff] %v1540_v54  ;;  %v646_v1 = vmul.f32 1.442695, %v1540_v54 }
 0x17e   : > { %684 = vadd.xlane.f32.xlu1 %v1425_v58  ;;  %v577_v61 = vpop.xlane.xlu0 %576  ;;  %v658_v5 = vmul.f32 %v1425_v58, %v1444_v4  ;;  %v1467_v29 = vsub.f32 %v1350_v11, %v579_v16 }
 0x17f   : > { %v1441_v3 = vsub.f32 %v1335_v6, %v577_v61 }
 0x180   : > { %v1437_v0 = vpop.eup %1140  ;;  %v626_v11 = vmul.f32 1.442695, %v1467_v29 }
 0x181   : > { %700 = vadd.xlane.f32.xlu0 %v650_v63  ;;  %v624_v14 = vmul.f32 1.442695, %v1441_v3  ;;  %v1455_v6 = vpop.eup %1142  ;;  %v656_v21 = vmul.f32 %v1437_v0, %v1472_v33  ;;  %v595_v43 = vpop.xlane.xlu1 %594  ;;  %v1545_v63 = vsel %vm376_vm9, 1.0, %v1239_v59 }
 0x182   : > { %680 = vadd.xlane.f32.xlu1 %v1437_v0  ;;  %v593_v37 = vpop.xlane.xlu0 %592  ;;  %v651_v22 = vmul.f32 %v1455_v6, %v1487_v38 }
 0x183   : > { %1150 = vpow2.f32 %v624_v14  ;;  %v1496_v39 = vsub.f32 %v1342_v9, %v593_v37  ;;  %v1510_v9 = vsub.f32 %v1354_v12, %v595_v43  ;;  %v1566_v14 = vsel %vm377_vm11, 1.0, %v1239_v59 }
 0x184   : > { %v1469_v30 = vpop.eup %1144  ;;  %1152 = vpow2.f32 %v630_v8 }
 0x185   : > { %716 = vadd.xlane.f32.xlu0 %v658_v5  ;;  %v1484_v35 = vpop.eup %1146  ;;  %1154 = vpow2.f32 %v626_v11  ;;  %v649_v15 = vmul.f32 %v1469_v30, %v1501_v44  ;;  %v640_v45 = vmul.f32 1.442695, %v1496_v39  ;;  %1709 = vst [vmem:[#allocation2_spill] sm:$0xff] %v1510_v9  ;;  %v642_v12 = vmul.f32 1.442695, %v1510_v9  ;;  %v364_v43 = vpop.permute.xlu1 %363 }
 0x186   : > { %670 = vadd.xlane.f32.xlu1 %v1455_v6  ;;  %1156 = vpow2.f32 %v638_v2  ;;  %v657_v23 = vmul.f32 %v1484_v35, %v1515_v48  ;;  %vm387_vm0 = vcmp.eq.f32.partialorder %v364_v43, %v1407_v49 }
 0x187   : > { %1158 = vpow2.f32 %v640_v45 }
 0x188   : > { %v1498_v40 = vpop.eup %1148  ;;  %1160 = vpow2.f32 %v642_v12 }
 0x189   : > { %696 = vadd.xlane.f32.xlu0 %v648_v20  ;;  %v654_v24 = vmul.f32 %v1498_v40, %v1530_v56  ;;  %1162 = vpow2.f32 %v644_v7 }
 0x18a   : > { %666 = vadd.xlane.f32.xlu1 %v1469_v30  ;;  %1164 = vpow2.f32 %v646_v1  ;;  %v359_v8 = vpop.permute.xlu0 %358 }
 0x18b   : > { %vm386_vm14 = vcmp.eq.f32.partialorder %v359_v8, %v1407_v49 }
 0x18d   : > { %712 = vadd.xlane.f32.xlu0 %v656_v21 }
 0x18e   : > { %682 = vadd.xlane.f32.xlu1 %v1484_v35 }
 0x190   : > { %v1512_v46 = vpop.eup %1150 }
 0x191   : > { %702 = vadd.xlane.f32.xlu0 %v651_v22  ;;  %v1527_v53 = vpop.eup %1152  ;;  %v652_v17 = vmul.f32 %v1512_v46, %v1545_v63  ;;  %v1593_v22 = vsel %vm386_vm14, 1.0, %v1239_v59 }
 0x192   : > { %676 = vadd.xlane.f32.xlu1 %v1498_v40  ;;  %v1542_v61 = vpop.eup %1154  ;;  %v655_v19 = vmul.f32 %v1527_v53, %v1556_v62 }
 0x193   : > { %v1553_v10 = vpop.eup %1156  ;;  %v653_v16 = vmul.f32 %v1542_v61, %v1566_v14 }
 0x194   : > { %v1563_v5 = vpop.eup %1158  ;;  %v659_v21 = vmul.f32 %v1553_v10, %v1576_v18 }
 0x195   : > { %698 = vadd.xlane.f32.xlu0 %v649_v15  ;;  %v1573_v20 = vpop.eup %1160  ;;  %v660_v37 = vmul.f32 %v1563_v5, %v1587_v26  ;;  %v1603_v15 = vsel %vm385_vm15, 1.0, %v1239_v59 }
 0x196   : > { %672 = vadd.xlane.f32.xlu1 %v1512_v46  ;;  %v1583_v11 = vpop.eup %1162  ;;  %v661_v45 = vmul.f32 %v1573_v20, %v1603_v15 }
 0x197   : > { %v1595_v27 = vpop.eup %1164  ;;  %v662_v2 = vmul.f32 %v1583_v11, %v1593_v22 }
 0x199   : > { %714 = vadd.xlane.f32.xlu0 %v657_v23  ;;  %v1610_v23 = vsel %vm387_vm0, 1.0, %v1239_v59 }
 0x19a   : > { %678 = vadd.xlane.f32.xlu1 %v1527_v53  ;;  %v663_v28 = vmul.f32 %v1595_v27, %v1610_v23 }
 0x19d   : > { %708 = vadd.xlane.f32.xlu0 %v654_v24 }
 0x19e   : > { %674 = vadd.xlane.f32.xlu1 %v1542_v61 }
 0x1a1   : > { %704 = vadd.xlane.f32.xlu0 %v652_v17 }
 0x1a2   : > { %686 = vadd.xlane.f32.xlu1 %v1553_v10 }
 0x1a5   : > { %710 = vadd.xlane.f32.xlu0 %v655_v19 }
 0x1a6   : > { %688 = vadd.xlane.f32.xlu1 %v1563_v5 }
 0x1a9   : > { %706 = vadd.xlane.f32.xlu0 %v653_v16 }
 0x1aa   : > { %690 = vadd.xlane.f32.xlu1 %v1573_v20 }
 0x1ad   : > { %718 = vadd.xlane.f32.xlu0 %v659_v21 }
 0x1ae   : > { %692 = vadd.xlane.f32.xlu1 %v1583_v11 }
 0x1b1   : > { %720 = vadd.xlane.f32.xlu0 %v660_v37 }
 0x1b2   : > { %694 = vadd.xlane.f32.xlu1 %v1595_v27 }
 0x1b5   : > { %724 = vadd.xlane.f32.xlu0 %v662_v2 }
 0x1b6   : > { %856 = vadd.xlane.f32.xlu1 %v1458_v25 }
 0x1b9   : > { %722 = vadd.xlane.f32.xlu0 %v661_v45 }
 0x1ba   : > { %860 = vadd.xlane.f32.xlu1 %v1429_v60 }
 0x1bd   : > { %726 = vadd.xlane.f32.xlu0 %v663_v28 }
 0x1be   : > { %864 = vadd.xlane.f32.xlu1 %v1545_v63 }
 0x1c1   : > { %858 = vadd.xlane.f32.xlu0 %v1501_v44 }
 0x1c2   : > { %868 = vadd.xlane.f32.xlu1 %v1530_v56 }
 0x1c5   : > { %862 = vadd.xlane.f32.xlu0 %v1487_v38 }
 0x1c6   : > { %872 = vadd.xlane.f32.xlu1 %v1472_v33 }
 0x1c9   : > { %866 = vadd.xlane.f32.xlu0 %v1566_v14 }
 0x1ca   : > { %874 = vadd.xlane.f32.xlu1 %v1515_v48 }
 0x1cd   : > { %870 = vadd.xlane.f32.xlu0 %v1556_v62 }
 0x1ce   : > { %876 = vadd.xlane.f32.xlu1 %v1444_v4 }
 0x1d2   : > { %878 = vadd.xlane.f32.xlu1 %v1576_v18 }
 0x201   : > { %v669_v49 = vpop.xlane.xlu1 %668 }
 0x206   : > { %v665_v59 = vpop.xlane.xlu0 %664 }
 0x207   : > { %v685_v12 = vpop.xlane.xlu1 %684 }
 0x20a   : > { %v701_v24 = vpop.xlane.xlu0 %700 }
 0x20b   : > { %v730_v7 = vsub.f32 %v669_v49, %v701_v24  ;;  %v681_v17 = vpop.xlane.xlu1 %680 }
 0x20d   : > { %v746_v1 = vadd.f32 %v1413_v52, %v730_v7 }
 0x20e   : > { %v717_v19 = vpop.xlane.xlu0 %716 }
 0x20f   : > { %1166 = vlog2.f32 %v746_v1  ;;  %v671_v16 = vpop.xlane.xlu1 %670  ;;  %v738_v51 = vsub.f32 %v685_v12, %v717_v19 }
 0x212   : > { %v697_v8 = vpop.xlane.xlu0 %696 }
 0x213   : > { %v728_v21 = vsub.f32 %v665_v59, %v697_v8  ;;  %v667_v37 = vpop.xlane.xlu1 %666  ;;  %v754_v8 = vadd.f32 %v1425_v58, %v738_v51 }
 0x215   : > { %v744_v2 = vadd.f32 %v1419_v55, %v728_v21 }
 0x216   : > { %v713_v43 = vpop.xlane.xlu0 %712 }
 0x217   : > { %1168 = vlog2.f32 %v744_v2  ;;  %v683_v45 = vpop.xlane.xlu1 %682 }
 0x21a   : > { %v703_v28 = vpop.xlane.xlu0 %702 }
 0x21b   : > { %v731_v54 = vsub.f32 %v671_v16, %v703_v28  ;;  %v677_v9 = vpop.xlane.xlu1 %676  ;;  %v736_v28 = vsub.f32 %v681_v17, %v713_v43 }
 0x21c   : > { %v1167_v18 = vpop.eup %1166 }
 0x21d   : > { %v747_v49 = vadd.f32 %v1455_v6, %v731_v54  ;;  %v765_v24 = vmul.f32 0.6931472, %v1167_v18 }
 0x21e   : > { %v699_v52 = vpop.xlane.xlu0 %698 }
 0x21f   : > { %1170 = vlog2.f32 %v747_v49  ;;  %v729_v7 = vsub.f32 %v667_v37, %v699_v52  ;;  %v673_v1 = vpop.xlane.xlu1 %672  ;;  %v794_v59 = vsub.f32 %v1384_v31, %v765_v24 }
 0x221   : > { %v745_v55 = vadd.f32 %v1469_v30, %v729_v7  ;;  %v810_v21 = vmul.f32 %v1429_v60, %v794_v59 }
 0x222   : > { %v715_v2 = vpop.xlane.xlu0 %714 }
 0x223   : > { %1172 = vlog2.f32 %v745_v55  ;;  %v679_v16 = vpop.xlane.xlu1 %678  ;;  %828 = vadd.xlane.f32.xlu0 %v810_v21 }
 0x224   : > { %v1169_v12 = vpop.eup %1168  ;;  %1174 = vlog2.f32 %v754_v8  ;;  %v737_v8 = vsub.f32 %v683_v45, %v715_v2 }
 0x225   : > { %v761_v6 = vmul.f32 0.6931472, %v1169_v12 }
 0x226   : > { %v709_v54 = vpop.xlane.xlu0 %708 }
 0x227   : > { %v734_v18 = vsub.f32 %v677_v9, %v709_v54  ;;  %v675_v19 = vpop.xlane.xlu1 %674  ;;  %v792_v37 = vsub.f32 %v1389_v36, %v761_v6 }
 0x229   : > { %v750_v31 = vadd.f32 %v1498_v40, %v734_v18  ;;  %v808_v58 = vmul.f32 %v1458_v25, %v792_v37  ;;  %v752_v25 = vadd.f32 %v1437_v0, %v736_v28  ;;  %v753_v0 = vadd.f32 %v1484_v35, %v737_v8 }
 0x22a   : > { %v705_v51 = vpop.xlane.xlu0 %704 }
 0x22b   : > { %1176 = vlog2.f32 %v750_v31  ;;  %v732_v30 = vsub.f32 %v673_v1, %v705_v51  ;;  %824 = vadd.xlane.f32.xlu1 %v808_v58  ;;  %v687_v49 = vpop.xlane.xlu1 %686 }
 0x22c   : > { %v1171_v60 = vpop.eup %1170 }
 0x22d   : > { %v748_v24 = vadd.f32 %v1512_v46, %v732_v30  ;;  %v767_v52 = vmul.f32 0.6931472, %v1171_v60 }
 0x22e   : > { %v711_v7 = vpop.xlane.xlu0 %710 }
 0x22f   : > { %1178 = vlog2.f32 %v748_v24  ;;  %v735_v9 = vsub.f32 %v679_v16, %v711_v7  ;;  %880 = vadd.xlane.f32.xlu1 %v1587_v26  ;;  %v795_v36 = vsub.f32 %v1397_v42, %v767_v52  ;;  %v689_v55 = vpop.xlane.xlu1 %688 }
 0x230   : > { %v1173_v40 = vpop.eup %1172 }
 0x231   : > { %v1175_v59 = vpop.eup %1174  ;;  %v751_v1 = vadd.f32 %v1527_v53, %v735_v9  ;;  %v811_v17 = vmul.f32 %v1487_v38, %v795_v36  ;;  %v763_v43 = vmul.f32 0.6931472, %v1173_v40 }
 0x232   : > { %v707_v46 = vpop.xlane.xlu0 %706  ;;  %v781_v42 = vmul.f32 0.6931472, %v1175_v59 }
 0x233   : > { %1180 = vlog2.f32 %v751_v1  ;;  %v733_v21 = vsub.f32 %v675_v19, %v707_v46  ;;  %882 = vadd.xlane.f32.xlu1 %v1603_v15  ;;  %830 = vadd.xlane.f32.xlu0 %v811_v17  ;;  %v793_v16 = vsub.f32 %v1401_v47, %v763_v43  ;;  %v691_v6 = vpop.xlane.xlu1 %690 }
 0x234   : > { %1182 = vlog2.f32 %v752_v25  ;;  %v802_v54 = vsub.f32 %v1386_v32, %v781_v42 }
 0x235   : > { %v749_v45 = vadd.f32 %v1542_v61, %v733_v21  ;;  %v809_v53 = vmul.f32 %v1501_v44, %v793_v16 }
 0x236   : > { %v719_v2 = vpop.xlane.xlu0 %718  ;;  %v818_v37 = vmul.f32 %v1444_v4, %v802_v54 }
 0x237   : > { %1184 = vlog2.f32 %v749_v45  ;;  %v739_v38 = vsub.f32 %v687_v49, %v719_v2  ;;  %884 = vadd.xlane.f32.xlu1 %v1593_v22  ;;  %826 = vadd.xlane.f32.xlu0 %v809_v53  ;;  %v693_v32 = vpop.xlane.xlu1 %692  ;;  %v1713_v45 = vld [vmem:[#allocation3_spill] sm:$0xff] }
 0x238   : > { %v1177_v12 = vpop.eup %1176  ;;  %1186 = vlog2.f32 %v753_v0 }
 0x239   : > { %v755_v47 = vadd.f32 %v1553_v10, %v739_v38  ;;  %v773_v18 = vmul.f32 0.6931472, %v1177_v12 }
 0x23a   : > { %v721_v19 = vpop.xlane.xlu0 %720 }
 0x23b   : > { %v740_v35 = vsub.f32 %v689_v55, %v721_v19  ;;  %886 = vadd.xlane.f32.xlu1 %v1610_v23  ;;  %v798_v44 = vsub.f32 %v1423_v57, %v773_v18  ;;  %1188 = vlog2.f32 %v755_v47  ;;  %v695_v59 = vpop.xlane.xlu1 %694 }
 0x23c   : > { %v1179_v61 = vpop.eup %1178 }
 0x23d   : > { %v756_v31 = vadd.f32 %v1563_v5, %v740_v35  ;;  %v814_v58 = vmul.f32 %v1530_v56, %v798_v44  ;;  %v769_v51 = vmul.f32 0.6931472, %v1179_v61 }
 0x23e   : > { %v725_v30 = vpop.xlane.xlu0 %724 }
 0x23f   : > { %1190 = vlog2.f32 %v756_v31  ;;  %v742_v10 = vsub.f32 %v693_v32, %v725_v30  ;;  %844 = vadd.xlane.f32.xlu1 %v818_v37  ;;  %836 = vadd.xlane.f32.xlu0 %v814_v58  ;;  %v796_v60 = vsub.f32 %v1441_v3, %v769_v51  ;;  %v857_v19 = vpop.xlane.xlu1 %856 }
 0x240   : > { %v1181_v28 = vpop.eup %1180 }
 0x241   : > { %v758_v57 = vadd.f32 %v1583_v11, %v742_v10  ;;  %v812_v49 = vmul.f32 %v1545_v63, %v796_v60  ;;  %v775_v4 = vmul.f32 0.6931472, %v1181_v28  ;;  %v1183_v24 = vpop.eup %1182 }
 0x242   : > { %v723_v52 = vpop.xlane.xlu0 %722  ;;  %v777_v3 = vmul.f32 0.6931472, %v1183_v24 }
 0x243   : > { %1192 = vlog2.f32 %v758_v57  ;;  %v741_v5 = vsub.f32 %v691_v6, %v723_v52  ;;  %832 = vadd.xlane.f32.xlu0 %v812_v49  ;;  %v799_v56 = vsub.f32 %v1452_v13, %v775_v4  ;;  %v861_v35 = vpop.xlane.xlu1 %860 }
 0x244   : > { %v1185_v7 = vpop.eup %1184  ;;  %v800_v13 = vsub.f32 %v1395_v41, %v777_v3 }
 0x245   : > { %v757_v9 = vadd.f32 %v1573_v20, %v741_v5  ;;  %v815_v36 = vmul.f32 %v1556_v62, %v799_v56  ;;  %v771_v40 = vmul.f32 0.6931472, %v1185_v7  ;;  %v1187_v25 = vpop.eup %1186 }
 0x246   : > { %v727_v11 = vpop.xlane.xlu0 %726  ;;  %v779_v43 = vmul.f32 0.6931472, %v1187_v25  ;;  %v816_v55 = vmul.f32 %v1472_v33, %v800_v13 }
 0x247   : > { %1194 = vlog2.f32 %v757_v9  ;;  %v743_v63 = vsub.f32 %v695_v59, %v727_v11  ;;  %838 = vadd.xlane.f32.xlu0 %v815_v36  ;;  %v797_v8 = vsub.f32 %v1467_v29, %v771_v40  ;;  %v865_v44 = vpop.xlane.xlu1 %864 }
 0x248   : > { %v1189_v20 = vpop.eup %1188  ;;  %v801_v46 = vsub.f32 %v1410_v50, %v779_v43  ;;  %v1714_v50 = vld [vmem:[#allocation5_spill] sm:$0xff] }
 0x249   : > { %v759_v1 = vadd.f32 %v1595_v27, %v743_v63  ;;  %v813_v17 = vmul.f32 %v1566_v14, %v797_v8  ;;  %v783_v16 = vmul.f32 0.6931472, %v1189_v20 }
 0x24a   : > { %v817_v27 = vmul.f32 %v1515_v48, %v801_v46  ;;  %v859_v37 = vpop.xlane.xlu0 %858 }
 0x24b   : > { %1196 = vlog2.f32 %v759_v1  ;;  %834 = vadd.xlane.f32.xlu0 %v813_v17  ;;  %v803_v41 = vsub.f32 %v1481_v34, %v783_v16  ;;  %v1716_v34 = vld [vmem:[#allocation4_spill] sm:$0xff]  ;;  %v869_v61 = vpop.xlane.xlu1 %868 }
 0x24c   : > { %v1191_v62 = vpop.eup %1190  ;;  %1198 = vrcp.f32 %v859_v37 }
 0x24d   : > { %v785_v21 = vmul.f32 0.6931472, %v1191_v62  ;;  %v819_v38 = vmul.f32 %v1714_v50, %v803_v41  ;;  %1200 = vrcp.f32 %v857_v19 }
 0x24e   : > { %v863_v31 = vpop.xlane.xlu0 %862  ;;  %1202 = vrcp.f32 %v861_v35 }
 0x24f   : > { %840 = vadd.xlane.f32.xlu0 %v816_v55  ;;  %v804_v29 = vsub.f32 %v1496_v39, %v785_v21  ;;  %v1715_v39 = vld [vmem:[#allocation2_spill] sm:$0xff]  ;;  %1204 = vrcp.f32 %v865_v44 }
 0x250   : > { %v1193_v42 = vpop.eup %1192  ;;  %1206 = vrcp.f32 %v863_v31 }
 0x251   : > { %v820_v14 = vmul.f32 %v1587_v26, %v804_v29  ;;  %v789_v0 = vmul.f32 0.6931472, %v1193_v42  ;;  %1208 = vrcp.f32 %v869_v61 }
 0x252   : > { %v867_v51 = vpop.xlane.xlu0 %866 }
 0x253   : > { %842 = vadd.xlane.f32.xlu0 %v817_v27  ;;  %848 = vadd.xlane.f32.xlu1 %v820_v14  ;;  %v806_v53 = vsub.f32 %v1713_v45, %v789_v0  ;;  %1210 = vrcp.f32 %v867_v51 }
 0x254   : > { %v1195_v33 = vpop.eup %1194 }
 0x255   : > { %v787_v2 = vmul.f32 0.6931472, %v1195_v33  ;;  %v822_v12 = vmul.f32 %v1593_v22, %v806_v53  ;;  %v873_v22 = vpop.xlane.xlu1 %872 }
 0x256   : > { %v871_v30 = vpop.xlane.xlu0 %870 }
 0x257   : > { %846 = vadd.xlane.f32.xlu0 %v819_v38  ;;  %852 = vadd.xlane.f32.xlu1 %v822_v12  ;;  %v805_v6 = vsub.f32 %v1715_v39, %v787_v2  ;;  %1212 = vrcp.f32 %v871_v30 }
 0x258   : > { %v1197_v48 = vpop.eup %1196  ;;  %1214 = vrcp.f32 %v873_v22 }
 0x259   : > { %v791_v54 = vmul.f32 0.6931472, %v1197_v48  ;;  %v821_v26 = vmul.f32 %v1603_v15, %v805_v6  ;;  %v875_v58 = vpop.xlane.xlu1 %874  ;;  %v1199_v49 = vpop.eup %1198 }
 0x25a   : > { %v1201_v24 = vpop.eup %1200  ;;  %1216 = vrcp.f32 %v875_v58 }
 0x25b   : > { %850 = vadd.xlane.f32.xlu0 %v821_v26  ;;  %v807_v47 = vsub.f32 %v1716_v34, %v791_v54  ;;  %v1203_v9 = vpop.eup %1202 }
 0x25c   : > { %v1205_v11 = vpop.eup %1204 }
 0x25d   : > { %v823_v18 = vmul.f32 %v1610_v23, %v807_v47  ;;  %v877_v32 = vpop.xlane.xlu1 %876  ;;  %v1207_v63 = vpop.eup %1206 }
 0x25e   : > { %1218 = vrcp.f32 %v877_v32  ;;  %v1209_v62 = vpop.eup %1208 }
 0x25f   : > { %854 = vadd.xlane.f32.xlu0 %v823_v18 }
 0x260   : > { %v1211_v21 = vpop.eup %1210 }
 0x261   : > { %v879_v10 = vpop.xlane.xlu1 %878 }
 0x262   : > { %1220 = vrcp.f32 %v879_v10 }
 0x264   : > { %v1213_v14 = vpop.eup %1212 }
 0x265   : > { %v1215_v53 = vpop.eup %1214 }
 0x267   : > { %v1217_v6 = vpop.eup %1216 }
 0x26b   : > { %v1219_v54 = vpop.eup %1218 }
 0x26f   : > { %v1221_v61 = vpop.eup %1220 }
 0x2ac   : > { %v829_v15 = vpop.xlane.xlu0 %828 }
 0x2ad   : > { %v906_v36 = vmul.f32 %v1203_v9, %v829_v15 }
 0x2af   : > { %v924_v8 = vsel %vm920_vm1, %v906_v36, 0.0 }
 0x2b4   : > { %v825_v60 = vpop.xlane.xlu1 %824 }
 0x2b5   : > { %v904_v5 = vmul.f32 %v1201_v24, %v825_v60 }
 0x2b7   : > { %v921_v40 = vsel %vm920_vm1, %v904_v5, 0.0 }
 0x2b8   : > { %v881_v23 = vpop.xlane.xlu1 %880 }
 0x2b9   : > { %1222 = vrcp.f32 %v881_v23 }
 0x2bc   : > { %v831_v28 = vpop.xlane.xlu0 %830  ;;  %v883_v52 = vpop.xlane.xlu1 %882 }
 0x2bd   : > { %v907_v1 = vmul.f32 %v1207_v63, %v831_v28  ;;  %1224 = vrcp.f32 %v883_v52 }
 0x2bf   : > { %v926_v55 = vsel %vm920_vm1, %v907_v1, 0.0 }
 0x2c0   : > { %v827_v57 = vpop.xlane.xlu0 %826  ;;  %v885_v25 = vpop.xlane.xlu1 %884 }
 0x2c1   : > { %v905_v4 = vmul.f32 %v1199_v49, %v827_v57  ;;  %1226 = vrcp.f32 %v885_v25 }
 0x2c3   : > { %v922_v7 = vsel %vm920_vm1, %v905_v4, 0.0 }
 0x2c4   : > { %v923_v3 = vadd.f32 %v922_v7, %v921_v40  ;;  %v887_v20 = vpop.xlane.xlu1 %886 }
 0x2c5   : > { %1228 = vrcp.f32 %v887_v20 }
 0x2c6   : > { %v925_v13 = vadd.f32 %v924_v8, %v923_v3  ;;  %v1223_v22 = vpop.eup %1222 }
 0x2c8   : > { %v837_v56 = vpop.xlane.xlu0 %836  ;;  %v927_v16 = vadd.f32 %v926_v55, %v925_v13  ;;  %v845_v33 = vpop.xlane.xlu1 %844 }
 0x2c9   : > { %v910_v42 = vmul.f32 %v1209_v62, %v837_v56  ;;  %v914_v18 = vmul.f32 %v1219_v54, %v845_v33 }
 0x2ca   : > { %v1225_v60 = vpop.eup %1224 }
 0x2cb   : > { %v932_v38 = vsel %vm920_vm1, %v910_v42, 0.0  ;;  %v940_v51 = vsel %vm920_vm1, %v914_v18, 0.0 }
 0x2cc   : > { %v833_v59 = vpop.xlane.xlu0 %832 }
 0x2cd   : > { %v908_v17 = vmul.f32 %v1205_v11, %v833_v59 }
 0x2ce   : > { %v1227_v23 = vpop.eup %1226 }
 0x2cf   : > { %v928_v46 = vsel %vm920_vm1, %v908_v17, 0.0 }
 0x2d0   : > { %v839_v43 = vpop.xlane.xlu0 %838  ;;  %v929_v41 = vadd.f32 %v928_v46, %v927_v16 }
 0x2d1   : > { %v911_v0 = vmul.f32 %v1213_v14, %v839_v43 }
 0x2d2   : > { %v1229_v7 = vpop.eup %1228 }
 0x2d3   : > { %v934_v48 = vsel %vm920_vm1, %v911_v0, 0.0 }
 0x2d4   : > { %v835_v29 = vpop.xlane.xlu0 %834 }
 0x2d5   : > { %v909_v27 = vmul.f32 %v1211_v21, %v835_v29 }
 0x2d7   : > { %v930_v45 = vsel %vm920_vm1, %v909_v27, 0.0 }
 0x2d8   : > { %v931_v2 = vadd.f32 %v930_v45, %v929_v41  ;;  %v841_v50 = vpop.xlane.xlu0 %840 }
 0x2d9   : > { %v912_v12 = vmul.f32 %v1215_v53, %v841_v50 }
 0x2da   : > { %v933_v39 = vadd.f32 %v932_v38, %v931_v2 }
 0x2db   : > { %v936_v19 = vsel %vm920_vm1, %v912_v12, 0.0 }
 0x2dc   : > { %v935_v26 = vadd.f32 %v934_v48, %v933_v39  ;;  %v843_v34 = vpop.xlane.xlu0 %842  ;;  %v849_v47 = vpop.xlane.xlu1 %848 }
 0x2dd   : > { %v913_v35 = vmul.f32 %v1217_v6, %v843_v34  ;;  %v916_v32 = vmul.f32 %v1223_v22, %v849_v47 }
 0x2de   : > { %v937_v44 = vadd.f32 %v936_v19, %v935_v26 }
 0x2df   : > { %v938_v37 = vsel %vm920_vm1, %v913_v35, 0.0  ;;  %v944_v4 = vsel %vm920_vm1, %v916_v32, 0.0 }
 0x2e0   : > { %v939_v31 = vadd.f32 %v938_v37, %v937_v44  ;;  %v847_v58 = vpop.xlane.xlu0 %846  ;;  %v853_v15 = vpop.xlane.xlu1 %852 }
 0x2e1   : > { %v915_v30 = vmul.f32 %v1221_v61, %v847_v58  ;;  %v918_v24 = vmul.f32 %v1227_v23, %v853_v15 }
 0x2e2   : > { %v941_v10 = vadd.f32 %v940_v51, %v939_v31 }
 0x2e3   : > { %v942_v28 = vsel %vm920_vm1, %v915_v30, 0.0  ;;  %v948_v40 = vsel %vm920_vm1, %v918_v24, 0.0 }
 0x2e4   : > { %v943_v57 = vadd.f32 %v942_v28, %v941_v10  ;;  %v851_v49 = vpop.xlane.xlu0 %850 }
 0x2e5   : > { %v917_v52 = vmul.f32 %v1225_v60, %v851_v49 }
 0x2e6   : > { %v945_v5 = vadd.f32 %v944_v4, %v943_v57 }
 0x2e7   : > { %v946_v56 = vsel %vm920_vm1, %v917_v52, 0.0 }
 0x2e8   : > { %v947_v9 = vadd.f32 %v946_v56, %v945_v5  ;;  %v855_v36 = vpop.xlane.xlu0 %854 }
 0x2e9   : > { %v919_v3 = vmul.f32 %v1229_v7, %v855_v36 }
 0x2ea   : > { %v949_v25 = vadd.f32 %v948_v40, %v947_v9 }
 0x2eb   : > { %v950_v59 = vsel %vm920_vm1, %v919_v3, 0.0 }
 0x2ec   : > { %v951_v11 = vadd.f32 %v950_v59, %v949_v25 }
 0x2ee   : > { %952 = vadd.xlane.f32.xlu1 %v951_v11 }
 0x377   : > { %v953_v63 = vpop.xlane.xlu1 %952 }
 0x378   : > { %v954_v8 = vrot.slane %v953_v63, 4 }
 0x37a   : > { %v955_v1 = vadd.f32 %v954_v8, %v953_v63 }
 0x37c   : > { %v956_v17 = vrot.slane %v955_v1, 2 }
 0x37e   : > { %v957_v13 = vadd.f32 %v956_v17, %v955_v1 }
 0x380   : > { %v958_v43 = vrot.slane %v957_v13, 1 }
 0x382   : > { %v959_v20 = vadd.f32 %v958_v43, %v957_v13 }
 0x384   : > { %1120 = vpush %v959_v20 }
 0x3b5   : > { %s1121_s5 = spop %1120 }
 0x3b6   : > { %s961_s9 = smul.f32 -0.011160715, %s1121_s5 }
 0x3b8   : > { %v962_v62 = vstv %s961_s9 }
 0x3b9   : > { %964 = vst.msk [vmem:[%s247_s8] sm:$0x1] %vm963_vm2, %v962_v62 }
 0x3ba PF: > { %s14_s15 = sadd.s32 1, %s1236_s15  }
 0x3bb   : > { %p11_p4 = scmp.ge.s32.totalorder %s14_s15, 4  }
 0x3bd   :  { %13 = sbr.rel (!%p11_p4) target bundleno = 1 (0x1), region = 75 }

</bundles_post_ra>
